<compile_context>
chip_gen: v7x
topology: tpu7x:2x2x1
jax: 0.10.0
libtpu: 0.0.40
codegen_flags: <defaults>
</compile_context>

<pallas_src>
import math

import jax
import jax.numpy as jnp
from jax.experimental import pallas as pl
from jax.experimental.pallas import tpu as pltpu


# ----------------------------------------------------------------------------
# Pallas kernel: one grid step == one batch element.  At these shapes everything
# (packed projections, RoPE, attention, output projection) fits in VMEM.
# ----------------------------------------------------------------------------
def make_kernel(lora_scale: float):
    def kernel(x_ref, cos_ref, sin_ref,
               wq_ref, wk_ref, wv_ref, wo_ref,
               aq_ref, bq_ref, av_ref, bv_ref,
               o_ref):
        S = x_ref.shape[1]
        hd = cos_ref.shape[1]
        half = hd // 2
        nH = wq_ref.shape[1] // hd
        nKV = wk_ref.shape[1] // hd
        group = nH // nKV
        scale = 1.0 / math.sqrt(hd)
        f32 = jnp.float32
        cdt = jnp.bfloat16  # MXU compute dtype

        x = x_ref[0]               # (S, H)  bf16
        cos = cos_ref[...]         # (S, hd) f32
        sin = sin_ref[...]         # (S, hd) f32

        # ---- Packed, lane-dense projections (bf16 in, f32 accumulation). ----
        q = jnp.dot(x, wq_ref[...], preferred_element_type=f32)    # (S, nH*hd)
        k = jnp.dot(x, wk_ref[...], preferred_element_type=f32)    # (S, nKV*hd)
        v = jnp.dot(x, wv_ref[...], preferred_element_type=f32)    # (S, nKV*hd)

        # ---- LoRA adapters on q/v, fused across heads: (S,r) @ (r, n*hd). ----
        xa_q = jnp.dot(x, aq_ref[...], preferred_element_type=f32).astype(cdt)
        xa_v = jnp.dot(x, av_ref[...], preferred_element_type=f32).astype(cdt)
        q = q + lora_scale * jnp.dot(xa_q, bq_ref[...], preferred_element_type=f32)
        v = v + lora_scale * jnp.dot(xa_v, bv_ref[...], preferred_element_type=f32)

        # ---- RoPE applied ONCE to the packed Q and packed K (rotate_half per
        #      head block, done with static lane slices/concat only). ----------
        def rope(t, n):
            pieces = []
            for h in range(n):
                t1 = t[:, h * hd:h * hd + half]
                t2 = t[:, h * hd + half:(h + 1) * hd]
                pieces.append(-t2)
                pieces.append(t1)
            rot = jnp.concatenate(pieces, axis=-1)                 # (S, n*hd)
            c = jnp.concatenate([cos] * n, axis=-1)                # (S, n*hd)
            s = jnp.concatenate([sin] * n, axis=-1)
            return t * c + rot * s

        qb = (rope(q, nH) * scale).astype(cdt)   # fold 1/sqrt(hd) into Q
        kb = rope(k, nKV).astype(cdt)
        vb = v.astype(cdt)

        # ---- Causal additive bias (empty KV cache prefill), built once. ------
        row = jax.lax.broadcasted_iota(jnp.int32, (S, S), 0)
        col = jax.lax.broadcasted_iota(jnp.int32, (S, S), 1)
        bias = jnp.where(row >= col, 0.0, -1e30).astype(f32)

        # ---- Attention core.  Per-head work is inherently hd-wide; GQA by
        #      slicing the shared kv group (no repeat_kv materialization).
        # TODO(synk): for production nH/S, move heads onto a grid axis with
        # streamed weight tiles and use flash-style online softmax over kv tiles.
        ctx = []
        for h in range(nH):
            g = h // group
            q_h = qb[:, h * hd:(h + 1) * hd]              # (S, hd)
            k_g = kb[:, g * hd:(g + 1) * hd]              # (S, hd)
            v_g = vb[:, g * hd:(g + 1) * hd]              # (S, hd)
            scores = jax.lax.dot_general(                  # contract hd, no k.T
                q_h, k_g, (((1,), (1,)), ((), ())),
                preferred_element_type=f32) + bias         # (S, S) f32
            m = jnp.max(scores, axis=-1, keepdims=True)
            p = jnp.exp(scores - m)
            p = p * pl.reciprocal(jnp.sum(p, axis=-1, keepdims=True), approx=True)
            ctx.append(jnp.dot(p.astype(cdt), v_g,
                               preferred_element_type=f32).astype(cdt))

        # ---- Single lane-dense output projection: (S, nH*hd) @ (nH*hd, H). ---
        ctx = jnp.concatenate(ctx, axis=-1)                # (S, nH*hd)
        out = jnp.dot(ctx, wo_ref[...], preferred_element_type=f32)
        o_ref[0] = out.astype(o_ref.dtype)

    return kernel


def mistral_lora_attention(hidden_states, position_embeddings, cache_position,
                           position_ids, params, *, lora_scale):
    # cache_position / position_ids only feed the (empty) DynamicCache update in
    # the reference module, so they do not affect the output; kept for API parity.
    del cache_position, position_ids
    cos, sin = position_embeddings
    if cos.ndim == 3:      # HF emits (B, S, hd); identical across batch -> dedup
        cos, sin = cos[0], sin[0]

    B, S, H = hidden_states.shape
    nH, _, hd = params["wq"].shape
    nKV = params["wk"].shape[0]
    r = params["aq"].shape[1]
    cdt = jnp.bfloat16

    # One-time layout plumbing: pack per-head weights into lane-dense 2-D mats
    # and cast to bf16 (in a real model this is done once at load time).
    wq = jnp.transpose(params["wq"], (1, 0, 2)).reshape(H, nH * hd).astype(cdt)
    wk = jnp.transpose(params["wk"], (1, 0, 2)).reshape(H, nKV * hd).astype(cdt)
    wv = jnp.transpose(params["wv"], (1, 0, 2)).reshape(H, nKV * hd).astype(cdt)
    wo = params["wo"].reshape(nH * hd, H).astype(cdt)
    aq = params["aq"].astype(cdt)
    av = params["av"].astype(cdt)
    bq = params["bq"].reshape(r, nH * hd).astype(cdt)
    bv = params["bv"].reshape(r, nKV * hd).astype(cdt)

    x = hidden_states.astype(cdt)
    cos32 = cos.astype(jnp.float32)
    sin32 = sin.astype(jnp.float32)

    kernel = make_kernel(lora_scale)

    def whole(shape):
        n = len(shape)
        return pl.BlockSpec(shape, lambda b, _n=n: (0,) * _n)

    # TODO(synk): at real Mistral sizes (H=4096, nH=32, hd=128) the weights must
    # be streamed per head/kv-group via an extra grid axis + index_map (and the
    # kv length tiled with online softmax); resident weights are fine at these
    # small test shapes on all generations.
    out = pl.pallas_call(
        kernel,
        out_shape=jax.ShapeDtypeStruct((B, S, H), hidden_states.dtype),
        grid=(B,),
        in_specs=[
            pl.BlockSpec((1, S, H), lambda b: (b, 0, 0)),
            whole((S, hd)),
            whole((S, hd)),
            whole((H, nH * hd)),
            whole((H, nKV * hd)),
            whole((H, nKV * hd)),
            whole((nH * hd, H)),
            whole((H, r)),
            whole((r, nH * hd)),
            whole((H, r)),
            whole((r, nKV * hd)),
        ],
        out_specs=pl.BlockSpec((1, S, H), lambda b: (b, 0, 0)),
        compiler_params=pltpu.CompilerParams(
            dimension_semantics=("parallel",)),
    )(x, cos32, sin32, wq, wk, wv, wo, aq, bq, av, bv)
    return (out,)


# ----------------------------------------------------------------------------
# Plain-JAX f32 reference (same math) for a correctness check.
# ----------------------------------------------------------------------------
def reference(hidden_states, cos, sin, p, lora_scale):
    B, S, H = hidden_states.shape
    nH, _, hd = p["wq"].shape
    nKV = p["wk"].shape[0]
    group = nH // nKV
    scale = 1.0 / math.sqrt(hd)

    q = (jnp.einsum("bsh,nhd->bnsd", hidden_states, p["wq"])
         + lora_scale * jnp.einsum("bsh,hr,rnd->bnsd", hidden_states, p["aq"], p["bq"]))
    k = jnp.einsum("bsh,nhd->bnsd", hidden_states, p["wk"])
    v = (jnp.einsum("bsh,nhd->bnsd", hidden_states, p["wv"])
         + lora_scale * jnp.einsum("bsh,hr,rnd->bnsd", hidden_states, p["av"], p["bv"]))

    def rope(t):
        half = hd // 2
        rot = jnp.concatenate([-t[..., half:], t[..., :half]], axis=-1)
        return t * cos[None, None] + rot * sin[None, None]

    q, k = rope(q), rope(k)
    k = jnp.repeat(k, group, axis=1)
    v = jnp.repeat(v, group, axis=1)

    scores = jnp.einsum("bnqd,bnkd->bnqk", q, k) * scale
    causal = jnp.tril(jnp.ones((S, S), bool))
    scores = jnp.where(causal, scores, -1e30)
    probs = jax.nn.softmax(scores, axis=-1)
    attn = jnp.einsum("bnqk,bnkd->bnqd", probs, v)
    return jnp.einsum("bnsd,ndh->bsh", attn, p["wo"])


# ----------------------------------------------------------------------------
if __name__ == "__main__":
    # Small Mistral-like config.
    B, S, H = 2, 8, 128
    nH, nKV, hd = 4, 2, 32
    r, alpha = 8, 16
    lora_scale = alpha / r
    rope_theta = 10000.0

    key = jax.random.PRNGKey(0)
    ks = jax.random.split(key, 9)
    std = 0.05
    params = {
        "wq": std * jax.random.normal(ks[0], (nH, H, hd), jnp.float32),
        "wk": std * jax.random.normal(ks[1], (nKV, H, hd), jnp.float32),
        "wv": std * jax.random.normal(ks[2], (nKV, H, hd), jnp.float32),
        "wo": std * jax.random.normal(ks[3], (nH, hd, H), jnp.float32),
        "aq": std * jax.random.normal(ks[4], (H, r), jnp.float32),
        "bq": std * jax.random.normal(ks[5], (r, nH, hd), jnp.float32),
        "av": std * jax.random.normal(ks[6], (H, r), jnp.float32),
        "bv": std * jax.random.normal(ks[7], (r, nKV, hd), jnp.float32),
    }

    x = jax.random.normal(ks[8], (B, S, H), jnp.float32)

    # Rotary position embeddings (HF MistralRotaryEmbedding), shared across batch.
    pos = jnp.arange(S, dtype=jnp.float32)
    inv_freq = 1.0 / (rope_theta ** (jnp.arange(0, hd, 2, dtype=jnp.float32) / hd))
    freqs = pos[:, None] * inv_freq[None, :]
    emb = jnp.concatenate([freqs, freqs], axis=-1)           # (S, hd)
    cos = jnp.cos(emb)
    sin = jnp.sin(emb)

    cache_position = jnp.arange(S, dtype=jnp.int32)
    position_ids = jnp.broadcast_to(jnp.arange(S, dtype=jnp.int32)[None], (B, S))

    (out,) = mistral_lora_attention(x, (cos, sin), cache_position, position_ids,
                                    params, lora_scale=lora_scale)
    out = jax.block_until_ready(out)

    ref = reference(x, cos, sin, params, lora_scale)
    assert out.shape == (B, S, H)
    # bf16 matmul inputs + approx reciprocal vs. full-f32 reference.
    assert jnp.allclose(out, ref, atol=3e-2, rtol=3e-2), "mismatch vs reference"

    print("KERNEL_OK")
</pallas_src>

<mosaic_0001>
module attributes {stable_mosaic.version = 11 : i64} {
  func.func @kernel(%arg0: i32, %arg1: memref<1x8x128xbf16, #tpu.memory_space<vmem>>, %arg2: memref<8x32xf32, #tpu.memory_space<vmem>>, %arg3: memref<8x32xf32, #tpu.memory_space<vmem>>, %arg4: memref<128x128xbf16, #tpu.memory_space<vmem>>, %arg5: memref<128x64xbf16, #tpu.memory_space<vmem>>, %arg6: memref<128x64xbf16, #tpu.memory_space<vmem>>, %arg7: memref<128x128xbf16, #tpu.memory_space<vmem>>, %arg8: memref<128x8xbf16, #tpu.memory_space<vmem>>, %arg9: memref<8x128xbf16, #tpu.memory_space<vmem>>, %arg10: memref<128x8xbf16, #tpu.memory_space<vmem>>, %arg11: memref<8x64xbf16, #tpu.memory_space<vmem>>, %arg12: memref<1x8x128xf32, #tpu.memory_space<vmem>>) attributes {dimension_semantics = [#tpu.dimension_semantics<parallel>], iteration_bounds = array<i64: 2>, scalar_prefetch = 0 : i64, scratch_operands = 0 : i64, tpu.core_type = #tpu.core_type<tc>, window_params = [{transform_indices = @transform_0, window_bounds = array<i64: 1, 8, 128>}, {pipeline_mode = #tpu.pipeline_mode<synchronous>, transform_indices = @transform_1, window_bounds = array<i64: 8, 32>}, {pipeline_mode = #tpu.pipeline_mode<synchronous>, transform_indices = @transform_2, window_bounds = array<i64: 8, 32>}, {pipeline_mode = #tpu.pipeline_mode<synchronous>, transform_indices = @transform_3, window_bounds = array<i64: 128, 128>}, {pipeline_mode = #tpu.pipeline_mode<synchronous>, transform_indices = @transform_4, window_bounds = array<i64: 128, 64>}, {pipeline_mode = #tpu.pipeline_mode<synchronous>, transform_indices = @transform_5, window_bounds = array<i64: 128, 64>}, {pipeline_mode = #tpu.pipeline_mode<synchronous>, transform_indices = @transform_6, window_bounds = array<i64: 128, 128>}, {pipeline_mode = #tpu.pipeline_mode<synchronous>, transform_indices = @transform_7, window_bounds = array<i64: 128, 8>}, {pipeline_mode = #tpu.pipeline_mode<synchronous>, transform_indices = @transform_8, window_bounds = array<i64: 8, 128>}, {pipeline_mode = #tpu.pipeline_mode<synchronous>, transform_indices = @transform_9, window_bounds = array<i64: 128, 8>}, {pipeline_mode = #tpu.pipeline_mode<synchronous>, transform_indices = @transform_10, window_bounds = array<i64: 8, 64>}, {transform_indices = @transform_11, window_bounds = array<i64: 1, 8, 128>}]} {
    %c0 = arith.constant 0 : index
    %c0_0 = arith.constant 0 : index
    %c0_1 = arith.constant 0 : index
    %0 = vector.load %arg1[%c0, %c0_0, %c0_1] : memref<1x8x128xbf16, #tpu.memory_space<vmem>>, vector<1x8x128xbf16>
    %1 = vector.shape_cast %0 : vector<1x8x128xbf16> to vector<8x128xbf16>
    %c0_2 = arith.constant 0 : index
    %c0_3 = arith.constant 0 : index
    %2 = vector.load %arg2[%c0_2, %c0_3] : memref<8x32xf32, #tpu.memory_space<vmem>>, vector<8x32xf32>
    %c0_4 = arith.constant 0 : index
    %c0_5 = arith.constant 0 : index
    %3 = vector.load %arg3[%c0_4, %c0_5] : memref<8x32xf32, #tpu.memory_space<vmem>>, vector<8x32xf32>
    %c0_6 = arith.constant 0 : index
    %c0_7 = arith.constant 0 : index
    %4 = vector.load %arg4[%c0_6, %c0_7] : memref<128x128xbf16, #tpu.memory_space<vmem>>, vector<128x128xbf16>
    %cst = arith.constant dense<0.000000e+00> : vector<8x128xf32>
    %5 = tpu.matmul %1, %4, %cst {dimension_numbers = #tpu.dot_dimension_numbers<[1], [0], [0], [1], [0, 0, 1, 1], [], []>} : vector<8x128xbf16>, vector<128x128xbf16>, vector<8x128xf32> -> vector<8x128xf32>
    %c0_8 = arith.constant 0 : index
    %c0_9 = arith.constant 0 : index
    %6 = vector.load %arg5[%c0_8, %c0_9] : memref<128x64xbf16, #tpu.memory_space<vmem>>, vector<128x64xbf16>
    %cst_10 = arith.constant dense<0.000000e+00> : vector<8x64xf32>
    %7 = tpu.matmul %1, %6, %cst_10 {dimension_numbers = #tpu.dot_dimension_numbers<[1], [0], [0], [1], [0, 0, 1, 1], [], []>} : vector<8x128xbf16>, vector<128x64xbf16>, vector<8x64xf32> -> vector<8x64xf32>
    %c0_11 = arith.constant 0 : index
    %c0_12 = arith.constant 0 : index
    %8 = vector.load %arg6[%c0_11, %c0_12] : memref<128x64xbf16, #tpu.memory_space<vmem>>, vector<128x64xbf16>
    %cst_13 = arith.constant dense<0.000000e+00> : vector<8x64xf32>
    %9 = tpu.matmul %1, %8, %cst_13 {dimension_numbers = #tpu.dot_dimension_numbers<[1], [0], [0], [1], [0, 0, 1, 1], [], []>} : vector<8x128xbf16>, vector<128x64xbf16>, vector<8x64xf32> -> vector<8x64xf32>
    %c0_14 = arith.constant 0 : index
    %c0_15 = arith.constant 0 : index
    %10 = vector.load %arg8[%c0_14, %c0_15] : memref<128x8xbf16, #tpu.memory_space<vmem>>, vector<128x8xbf16>
    %cst_16 = arith.constant dense<0.000000e+00> : vector<8x8xf32>
    %11 = tpu.matmul %1, %10, %cst_16 {dimension_numbers = #tpu.dot_dimension_numbers<[1], [0], [0], [1], [0, 0, 1, 1], [], []>} : vector<8x128xbf16>, vector<128x8xbf16>, vector<8x8xf32> -> vector<8x8xf32>
    %12 = arith.truncf %11 : vector<8x8xf32> to vector<8x8xbf16>
    %c0_17 = arith.constant 0 : index
    %c0_18 = arith.constant 0 : index
    %13 = vector.load %arg10[%c0_17, %c0_18] : memref<128x8xbf16, #tpu.memory_space<vmem>>, vector<128x8xbf16>
    %cst_19 = arith.constant dense<0.000000e+00> : vector<8x8xf32>
    %14 = tpu.matmul %1, %13, %cst_19 {dimension_numbers = #tpu.dot_dimension_numbers<[1], [0], [0], [1], [0, 0, 1, 1], [], []>} : vector<8x128xbf16>, vector<128x8xbf16>, vector<8x8xf32> -> vector<8x8xf32>
    %15 = arith.truncf %14 : vector<8x8xf32> to vector<8x8xbf16>
    %c0_20 = arith.constant 0 : index
    %c0_21 = arith.constant 0 : index
    %16 = vector.load %arg9[%c0_20, %c0_21] : memref<8x128xbf16, #tpu.memory_space<vmem>>, vector<8x128xbf16>
    %cst_22 = arith.constant dense<0.000000e+00> : vector<8x128xf32>
    %17 = tpu.matmul %12, %16, %cst_22 {dimension_numbers = #tpu.dot_dimension_numbers<[1], [0], [0], [1], [0, 0, 1, 1], [], []>} : vector<8x8xbf16>, vector<8x128xbf16>, vector<8x128xf32> -> vector<8x128xf32>
    %cst_23 = arith.constant 2.000000e+00 : f32
    %18 = vector.broadcast %cst_23 : f32 to vector<8x128xf32>
    %19 = arith.mulf %18, %17 : vector<8x128xf32>
    %20 = arith.addf %5, %19 : vector<8x128xf32>
    %c0_24 = arith.constant 0 : index
    %c0_25 = arith.constant 0 : index
    %21 = vector.load %arg11[%c0_24, %c0_25] : memref<8x64xbf16, #tpu.memory_space<vmem>>, vector<8x64xbf16>
    %cst_26 = arith.constant dense<0.000000e+00> : vector<8x64xf32>
    %22 = tpu.matmul %15, %21, %cst_26 {dimension_numbers = #tpu.dot_dimension_numbers<[1], [0], [0], [1], [0, 0, 1, 1], [], []>} : vector<8x8xbf16>, vector<8x64xbf16>, vector<8x64xf32> -> vector<8x64xf32>
    %cst_27 = arith.constant 2.000000e+00 : f32
    %23 = vector.broadcast %cst_27 : f32 to vector<8x64xf32>
    %24 = arith.mulf %23, %22 : vector<8x64xf32>
    %25 = arith.addf %9, %24 : vector<8x64xf32>
    %26 = vector.extract_strided_slice %20 {offsets = [0, 0], sizes = [8, 16], strides = [1, 1]} : vector<8x128xf32> to vector<8x16xf32>
    %27 = vector.extract_strided_slice %20 {offsets = [0, 16], sizes = [8, 16], strides = [1, 1]} : vector<8x128xf32> to vector<8x16xf32>
    %cst_28 = arith.constant 0.000000e+00 : f32
    %28 = vector.broadcast %cst_28 : f32 to vector<8x16xf32>
    %29 = arith.subf %28, %27 : vector<8x16xf32>
    %30 = vector.extract_strided_slice %20 {offsets = [0, 32], sizes = [8, 16], strides = [1, 1]} : vector<8x128xf32> to vector<8x16xf32>
    %31 = vector.extract_strided_slice %20 {offsets = [0, 48], sizes = [8, 16], strides = [1, 1]} : vector<8x128xf32> to vector<8x16xf32>
    %cst_29 = arith.constant 0.000000e+00 : f32
    %32 = vector.broadcast %cst_29 : f32 to vector<8x16xf32>
    %33 = arith.subf %32, %31 : vector<8x16xf32>
    %34 = vector.extract_strided_slice %20 {offsets = [0, 64], sizes = [8, 16], strides = [1, 1]} : vector<8x128xf32> to vector<8x16xf32>
    %35 = vector.extract_strided_slice %20 {offsets = [0, 80], sizes = [8, 16], strides = [1, 1]} : vector<8x128xf32> to vector<8x16xf32>
    %cst_30 = arith.constant 0.000000e+00 : f32
    %36 = vector.broadcast %cst_30 : f32 to vector<8x16xf32>
    %37 = arith.subf %36, %35 : vector<8x16xf32>
    %38 = vector.extract_strided_slice %20 {offsets = [0, 96], sizes = [8, 16], strides = [1, 1]} : vector<8x128xf32> to vector<8x16xf32>
    %39 = vector.extract_strided_slice %20 {offsets = [0, 112], sizes = [8, 16], strides = [1, 1]} : vector<8x128xf32> to vector<8x16xf32>
    %cst_31 = arith.constant 0.000000e+00 : f32
    %40 = vector.broadcast %cst_31 : f32 to vector<8x16xf32>
    %41 = arith.subf %40, %39 : vector<8x16xf32>
    %42 = tpu.concatenate %29, %26, %33, %30, %37, %34, %41, %38 in 1 : vector<8x16xf32>, vector<8x16xf32>, vector<8x16xf32>, vector<8x16xf32>, vector<8x16xf32>, vector<8x16xf32>, vector<8x16xf32>, vector<8x16xf32> -> vector<8x128xf32>
    %43 = tpu.concatenate %2, %2, %2, %2 in 1 : vector<8x32xf32>, vector<8x32xf32>, vector<8x32xf32>, vector<8x32xf32> -> vector<8x128xf32>
    %44 = tpu.concatenate %3, %3, %3, %3 in 1 : vector<8x32xf32>, vector<8x32xf32>, vector<8x32xf32>, vector<8x32xf32> -> vector<8x128xf32>
    %45 = arith.mulf %20, %43 : vector<8x128xf32>
    %46 = arith.mulf %42, %44 : vector<8x128xf32>
    %47 = arith.addf %45, %46 : vector<8x128xf32>
    %cst_32 = arith.constant 0.176776692 : f32
    %48 = vector.broadcast %cst_32 : f32 to vector<8x128xf32>
    %49 = arith.mulf %47, %48 : vector<8x128xf32>
    %50 = arith.truncf %49 : vector<8x128xf32> to vector<8x128xbf16>
    %51 = vector.extract_strided_slice %7 {offsets = [0, 0], sizes = [8, 16], strides = [1, 1]} : vector<8x64xf32> to vector<8x16xf32>
    %52 = vector.extract_strided_slice %7 {offsets = [0, 16], sizes = [8, 16], strides = [1, 1]} : vector<8x64xf32> to vector<8x16xf32>
    %cst_33 = arith.constant 0.000000e+00 : f32
    %53 = vector.broadcast %cst_33 : f32 to vector<8x16xf32>
    %54 = arith.subf %53, %52 : vector<8x16xf32>
    %55 = vector.extract_strided_slice %7 {offsets = [0, 32], sizes = [8, 16], strides = [1, 1]} : vector<8x64xf32> to vector<8x16xf32>
    %56 = vector.extract_strided_slice %7 {offsets = [0, 48], sizes = [8, 16], strides = [1, 1]} : vector<8x64xf32> to vector<8x16xf32>
    %cst_34 = arith.constant 0.000000e+00 : f32
    %57 = vector.broadcast %cst_34 : f32 to vector<8x16xf32>
    %58 = arith.subf %57, %56 : vector<8x16xf32>
    %59 = tpu.concatenate %54, %51, %58, %55 in 1 : vector<8x16xf32>, vector<8x16xf32>, vector<8x16xf32>, vector<8x16xf32> -> vector<8x64xf32>
    %60 = tpu.concatenate %2, %2 in 1 : vector<8x32xf32>, vector<8x32xf32> -> vector<8x64xf32>
    %61 = tpu.concatenate %3, %3 in 1 : vector<8x32xf32>, vector<8x32xf32> -> vector<8x64xf32>
    %62 = arith.mulf %7, %60 : vector<8x64xf32>
    %63 = arith.mulf %59, %61 : vector<8x64xf32>
    %64 = arith.addf %62, %63 : vector<8x64xf32>
    %65 = arith.truncf %64 : vector<8x64xf32> to vector<8x64xbf16>
    %66 = arith.truncf %25 : vector<8x64xf32> to vector<8x64xbf16>
    %67 = tpu.iota {dimensions = array<i32: 0>} : vector<8x8xi32>
    %68 = tpu.iota {dimensions = array<i32: 1>} : vector<8x8xi32>
    %69 = arith.cmpi sge, %67, %68 : vector<8x8xi32>
    %cst_35 = arith.constant 0.000000e+00 : f32
    %cst_36 = arith.constant -1.000000e+30 : f32
    %70 = vector.broadcast %cst_35 : f32 to vector<8x8xf32>
    %71 = vector.broadcast %cst_36 : f32 to vector<8x8xf32>
    %72 = arith.select %69, %70, %71 : vector<8x8xi1>, vector<8x8xf32>
    %73 = vector.extract_strided_slice %50 {offsets = [0, 0], sizes = [8, 32], strides = [1, 1]} : vector<8x128xbf16> to vector<8x32xbf16>
    %74 = vector.extract_strided_slice %65 {offsets = [0, 0], sizes = [8, 32], strides = [1, 1]} : vector<8x64xbf16> to vector<8x32xbf16>
    %75 = vector.extract_strided_slice %66 {offsets = [0, 0], sizes = [8, 32], strides = [1, 1]} : vector<8x64xbf16> to vector<8x32xbf16>
    %cst_37 = arith.constant dense<0.000000e+00> : vector<8x8xf32>
    %76 = tpu.matmul %73, %74, %cst_37 {dimension_numbers = #tpu.dot_dimension_numbers<[1], [1], [0], [0], [0, 0, 1, 0], [], []>} : vector<8x32xbf16>, vector<8x32xbf16>, vector<8x8xf32> -> vector<8x8xf32>
    %77 = arith.addf %76, %72 : vector<8x8xf32>
    %cst_38 = arith.constant dense<0xFF800000> : vector<8xf32>
    %78 = vector.multi_reduction <maximumf>, %77, %cst_38 [1] : vector<8x8xf32> to vector<8xf32>
    %79 = vector.shape_cast %78 : vector<8xf32> to vector<8x1xf32>
    %80 = vector.broadcast %79 : vector<8x1xf32> to vector<8x8xf32>
    %81 = arith.subf %77, %80 : vector<8x8xf32>
    %82 = math.exp %81 : vector<8x8xf32>
    %cst_39 = arith.constant dense<0.000000e+00> : vector<8xf32>
    %83 = vector.multi_reduction <add>, %82, %cst_39 [1] : vector<8x8xf32> to vector<8xf32>
    %84 = vector.shape_cast %83 : vector<8xf32> to vector<8x1xf32>
    %85 = tpu.reciprocal %84 {approx = true} : vector<8x1xf32> -> vector<8x1xf32>
    %86 = vector.broadcast %85 : vector<8x1xf32> to vector<8x8xf32>
    %87 = arith.mulf %82, %86 : vector<8x8xf32>
    %88 = arith.truncf %87 : vector<8x8xf32> to vector<8x8xbf16>
    %cst_40 = arith.constant dense<0.000000e+00> : vector<8x32xf32>
    %89 = tpu.matmul %88, %75, %cst_40 {dimension_numbers = #tpu.dot_dimension_numbers<[1], [0], [0], [1], [0, 0, 1, 1], [], []>} : vector<8x8xbf16>, vector<8x32xbf16>, vector<8x32xf32> -> vector<8x32xf32>
    %90 = arith.truncf %89 : vector<8x32xf32> to vector<8x32xbf16>
    %91 = vector.extract_strided_slice %50 {offsets = [0, 32], sizes = [8, 32], strides = [1, 1]} : vector<8x128xbf16> to vector<8x32xbf16>
    %92 = vector.extract_strided_slice %65 {offsets = [0, 0], sizes = [8, 32], strides = [1, 1]} : vector<8x64xbf16> to vector<8x32xbf16>
    %93 = vector.extract_strided_slice %66 {offsets = [0, 0], sizes = [8, 32], strides = [1, 1]} : vector<8x64xbf16> to vector<8x32xbf16>
    %cst_41 = arith.constant dense<0.000000e+00> : vector<8x8xf32>
    %94 = tpu.matmul %91, %92, %cst_41 {dimension_numbers = #tpu.dot_dimension_numbers<[1], [1], [0], [0], [0, 0, 1, 0], [], []>} : vector<8x32xbf16>, vector<8x32xbf16>, vector<8x8xf32> -> vector<8x8xf32>
    %95 = arith.addf %94, %72 : vector<8x8xf32>
    %cst_42 = arith.constant dense<0xFF800000> : vector<8xf32>
    %96 = vector.multi_reduction <maximumf>, %95, %cst_42 [1] : vector<8x8xf32> to vector<8xf32>
    %97 = vector.shape_cast %96 : vector<8xf32> to vector<8x1xf32>
    %98 = vector.broadcast %97 : vector<8x1xf32> to vector<8x8xf32>
    %99 = arith.subf %95, %98 : vector<8x8xf32>
    %100 = math.exp %99 : vector<8x8xf32>
    %cst_43 = arith.constant dense<0.000000e+00> : vector<8xf32>
    %101 = vector.multi_reduction <add>, %100, %cst_43 [1] : vector<8x8xf32> to vector<8xf32>
    %102 = vector.shape_cast %101 : vector<8xf32> to vector<8x1xf32>
    %103 = tpu.reciprocal %102 {approx = true} : vector<8x1xf32> -> vector<8x1xf32>
    %104 = vector.broadcast %103 : vector<8x1xf32> to vector<8x8xf32>
    %105 = arith.mulf %100, %104 : vector<8x8xf32>
    %106 = arith.truncf %105 : vector<8x8xf32> to vector<8x8xbf16>
    %cst_44 = arith.constant dense<0.000000e+00> : vector<8x32xf32>
    %107 = tpu.matmul %106, %93, %cst_44 {dimension_numbers = #tpu.dot_dimension_numbers<[1], [0], [0], [1], [0, 0, 1, 1], [], []>} : vector<8x8xbf16>, vector<8x32xbf16>, vector<8x32xf32> -> vector<8x32xf32>
    %108 = arith.truncf %107 : vector<8x32xf32> to vector<8x32xbf16>
    %109 = vector.extract_strided_slice %50 {offsets = [0, 64], sizes = [8, 32], strides = [1, 1]} : vector<8x128xbf16> to vector<8x32xbf16>
    %110 = vector.extract_strided_slice %65 {offsets = [0, 32], sizes = [8, 32], strides = [1, 1]} : vector<8x64xbf16> to vector<8x32xbf16>
    %111 = vector.extract_strided_slice %66 {offsets = [0, 32], sizes = [8, 32], strides = [1, 1]} : vector<8x64xbf16> to vector<8x32xbf16>
    %cst_45 = arith.constant dense<0.000000e+00> : vector<8x8xf32>
    %112 = tpu.matmul %109, %110, %cst_45 {dimension_numbers = #tpu.dot_dimension_numbers<[1], [1], [0], [0], [0, 0, 1, 0], [], []>} : vector<8x32xbf16>, vector<8x32xbf16>, vector<8x8xf32> -> vector<8x8xf32>
    %113 = arith.addf %112, %72 : vector<8x8xf32>
    %cst_46 = arith.constant dense<0xFF800000> : vector<8xf32>
    %114 = vector.multi_reduction <maximumf>, %113, %cst_46 [1] : vector<8x8xf32> to vector<8xf32>
    %115 = vector.shape_cast %114 : vector<8xf32> to vector<8x1xf32>
    %116 = vector.broadcast %115 : vector<8x1xf32> to vector<8x8xf32>
    %117 = arith.subf %113, %116 : vector<8x8xf32>
    %118 = math.exp %117 : vector<8x8xf32>
    %cst_47 = arith.constant dense<0.000000e+00> : vector<8xf32>
    %119 = vector.multi_reduction <add>, %118, %cst_47 [1] : vector<8x8xf32> to vector<8xf32>
    %120 = vector.shape_cast %119 : vector<8xf32> to vector<8x1xf32>
    %121 = tpu.reciprocal %120 {approx = true} : vector<8x1xf32> -> vector<8x1xf32>
    %122 = vector.broadcast %121 : vector<8x1xf32> to vector<8x8xf32>
    %123 = arith.mulf %118, %122 : vector<8x8xf32>
    %124 = arith.truncf %123 : vector<8x8xf32> to vector<8x8xbf16>
    %cst_48 = arith.constant dense<0.000000e+00> : vector<8x32xf32>
    %125 = tpu.matmul %124, %111, %cst_48 {dimension_numbers = #tpu.dot_dimension_numbers<[1], [0], [0], [1], [0, 0, 1, 1], [], []>} : vector<8x8xbf16>, vector<8x32xbf16>, vector<8x32xf32> -> vector<8x32xf32>
    %126 = arith.truncf %125 : vector<8x32xf32> to vector<8x32xbf16>
    %127 = vector.extract_strided_slice %50 {offsets = [0, 96], sizes = [8, 32], strides = [1, 1]} : vector<8x128xbf16> to vector<8x32xbf16>
    %128 = vector.extract_strided_slice %65 {offsets = [0, 32], sizes = [8, 32], strides = [1, 1]} : vector<8x64xbf16> to vector<8x32xbf16>
    %129 = vector.extract_strided_slice %66 {offsets = [0, 32], sizes = [8, 32], strides = [1, 1]} : vector<8x64xbf16> to vector<8x32xbf16>
    %cst_49 = arith.constant dense<0.000000e+00> : vector<8x8xf32>
    %130 = tpu.matmul %127, %128, %cst_49 {dimension_numbers = #tpu.dot_dimension_numbers<[1], [1], [0], [0], [0, 0, 1, 0], [], []>} : vector<8x32xbf16>, vector<8x32xbf16>, vector<8x8xf32> -> vector<8x8xf32>
    %131 = arith.addf %130, %72 : vector<8x8xf32>
    %cst_50 = arith.constant dense<0xFF800000> : vector<8xf32>
    %132 = vector.multi_reduction <maximumf>, %131, %cst_50 [1] : vector<8x8xf32> to vector<8xf32>
    %133 = vector.shape_cast %132 : vector<8xf32> to vector<8x1xf32>
    %134 = vector.broadcast %133 : vector<8x1xf32> to vector<8x8xf32>
    %135 = arith.subf %131, %134 : vector<8x8xf32>
    %136 = math.exp %135 : vector<8x8xf32>
    %cst_51 = arith.constant dense<0.000000e+00> : vector<8xf32>
    %137 = vector.multi_reduction <add>, %136, %cst_51 [1] : vector<8x8xf32> to vector<8xf32>
    %138 = vector.shape_cast %137 : vector<8xf32> to vector<8x1xf32>
    %139 = tpu.reciprocal %138 {approx = true} : vector<8x1xf32> -> vector<8x1xf32>
    %140 = vector.broadcast %139 : vector<8x1xf32> to vector<8x8xf32>
    %141 = arith.mulf %136, %140 : vector<8x8xf32>
    %142 = arith.truncf %141 : vector<8x8xf32> to vector<8x8xbf16>
    %cst_52 = arith.constant dense<0.000000e+00> : vector<8x32xf32>
    %143 = tpu.matmul %142, %129, %cst_52 {dimension_numbers = #tpu.dot_dimension_numbers<[1], [0], [0], [1], [0, 0, 1, 1], [], []>} : vector<8x8xbf16>, vector<8x32xbf16>, vector<8x32xf32> -> vector<8x32xf32>
    %144 = arith.truncf %143 : vector<8x32xf32> to vector<8x32xbf16>
    %145 = tpu.concatenate %90, %108, %126, %144 in 1 : vector<8x32xbf16>, vector<8x32xbf16>, vector<8x32xbf16>, vector<8x32xbf16> -> vector<8x128xbf16>
    %c0_53 = arith.constant 0 : index
    %c0_54 = arith.constant 0 : index
    %146 = vector.load %arg7[%c0_53, %c0_54] : memref<128x128xbf16, #tpu.memory_space<vmem>>, vector<128x128xbf16>
    %cst_55 = arith.constant dense<0.000000e+00> : vector<8x128xf32>
    %147 = tpu.matmul %145, %146, %cst_55 {dimension_numbers = #tpu.dot_dimension_numbers<[1], [0], [0], [1], [0, 0, 1, 1], [], []>} : vector<8x128xbf16>, vector<128x128xbf16>, vector<8x128xf32> -> vector<8x128xf32>
    %c0_56 = arith.constant 0 : index
    %c0_57 = arith.constant 0 : index
    %c0_58 = arith.constant 0 : index
    %148 = vector.load %arg12[%c0_56, %c0_57, %c0_58] : memref<1x8x128xf32, #tpu.memory_space<vmem>>, vector<1x8x128xf32>
    %149 = vector.shape_cast %148 : vector<1x8x128xf32> to vector<8x128xf32>
    %150 = vector.shape_cast %147 : vector<8x128xf32> to vector<1x8x128xf32>
    tpu.vector_store %arg12[%c0_56, %c0_57, %c0_58], %150 {strides = array<i32>} : memref<1x8x128xf32, #tpu.memory_space<vmem>>, vector<1x8x128xf32>,
    return
  }
  func.func @transform_0(%arg0: i32) -> (i32, i32, i32) {
    %c0_i32 = arith.constant 0 : i32
    %c0_i32_0 = arith.constant 0 : i32
    %c0_i32_1 = arith.constant 0 : i32
    return %arg0, %c0_i32, %c0_i32_0 : i32, i32, i32
  }
  func.func @transform_1(%arg0: i32) -> (i32, i32) {
    %c0_i32 = arith.constant 0 : i32
    %c0_i32_0 = arith.constant 0 : i32
    %c0_i32_1 = arith.constant 0 : i32
    return %c0_i32, %c0_i32_0 : i32, i32
  }
  func.func @transform_2(%arg0: i32) -> (i32, i32) {
    %c0_i32 = arith.constant 0 : i32
    %c0_i32_0 = arith.constant 0 : i32
    %c0_i32_1 = arith.constant 0 : i32
    return %c0_i32, %c0_i32_0 : i32, i32
  }
  func.func @transform_3(%arg0: i32) -> (i32, i32) {
    %c0_i32 = arith.constant 0 : i32
    %c0_i32_0 = arith.constant 0 : i32
    %c0_i32_1 = arith.constant 0 : i32
    return %c0_i32, %c0_i32_0 : i32, i32
  }
  func.func @transform_4(%arg0: i32) -> (i32, i32) {
    %c0_i32 = arith.constant 0 : i32
    %c0_i32_0 = arith.constant 0 : i32
    %c0_i32_1 = arith.constant 0 : i32
    return %c0_i32, %c0_i32_0 : i32, i32
  }
  func.func @transform_5(%arg0: i32) -> (i32, i32) {
    %c0_i32 = arith.constant 0 : i32
    %c0_i32_0 = arith.constant 0 : i32
    %c0_i32_1 = arith.constant 0 : i32
    return %c0_i32, %c0_i32_0 : i32, i32
  }
  func.func @transform_6(%arg0: i32) -> (i32, i32) {
    %c0_i32 = arith.constant 0 : i32
    %c0_i32_0 = arith.constant 0 : i32
    %c0_i32_1 = arith.constant 0 : i32
    return %c0_i32, %c0_i32_0 : i32, i32
  }
  func.func @transform_7(%arg0: i32) -> (i32, i32) {
    %c0_i32 = arith.constant 0 : i32
    %c0_i32_0 = arith.constant 0 : i32
    %c0_i32_1 = arith.constant 0 : i32
    return %c0_i32, %c0_i32_0 : i32, i32
  }
  func.func @transform_8(%arg0: i32) -> (i32, i32) {
    %c0_i32 = arith.constant 0 : i32
    %c0_i32_0 = arith.constant 0 : i32
    %c0_i32_1 = arith.constant 0 : i32
    return %c0_i32, %c0_i32_0 : i32, i32
  }
  func.func @transform_9(%arg0: i32) -> (i32, i32) {
    %c0_i32 = arith.constant 0 : i32
    %c0_i32_0 = arith.constant 0 : i32
    %c0_i32_1 = arith.constant 0 : i32
    return %c0_i32, %c0_i32_0 : i32, i32
  }
  func.func @transform_10(%arg0: i32) -> (i32, i32) {
    %c0_i32 = arith.constant 0 : i32
    %c0_i32_0 = arith.constant 0 : i32
    %c0_i32_1 = arith.constant 0 : i32
    return %c0_i32, %c0_i32_0 : i32, i32
  }
  func.func @transform_11(%arg0: i32) -> (i32, i32, i32) {
    %c0_i32 = arith.constant 0 : i32
    %c0_i32_0 = arith.constant 0 : i32
    %c0_i32_1 = arith.constant 0 : i32
    return %arg0, %c0_i32, %c0_i32_0 : i32, i32, i32
  }
}

</mosaic_0001>

<bundles_post_ra>
// kernel: tpu_custom_call.1
= control target key start
LH: loop header
LB: loop body
LE: loop exit
PB: predicated region body
PF: predicated region fallthrough
CT: control target
= control target key end

     0   :  { %s2715_s0 = inlined_call_operand.vmem [shape: bf16[2,8,128], index: 0, kind: input, shape index: {}]   ;;  %s2716_s1 = inlined_call_operand.vmem [shape: f32[8,32], index: 1, kind: input, shape index: {}]   ;;  %s2717_s2 = inlined_call_operand.vmem [shape: f32[8,32], index: 2, kind: input, shape index: {}]   ;;  %s2718_s3 = inlined_call_operand.vmem [shape: bf16[128,128], index: 3, kind: input, shape index: {}]   ;;  %s2719_s4 = inlined_call_operand.vmem [shape: bf16[128,64], index: 4, kind: input, shape index: {}]   ;;  %s2720_s5 = inlined_call_operand.vmem [shape: bf16[128,64], index: 5, kind: input, shape index: {}]   ;;  %s2721_s6 = inlined_call_operand.vmem [shape: bf16[128,128], index: 6, kind: input, shape index: {}]   ;;  %s2722_s7 = inlined_call_operand.vmem [shape: bf16[128,8], index: 7, kind: input, shape index: {}]   ;;  %s2723_s8 = inlined_call_operand.vmem [shape: bf16[8,128], index: 8, kind: input, shape index: {}]   ;;  %s2724_s9 = inlined_call_operand.vmem [shape: bf16[128,8], index: 9, kind: input, shape index: {}]   ;;  %s2725_s10 = inlined_call_operand.vmem [shape: bf16[8,64], index: 10, kind: input, shape index: {}]   ;;  %s2726_s11 = inlined_call_operand.hbm [shape: f32[2,8,128], index: 11, kind: output, shape index: {}]  }
   0x1   :  { %2729 = sst [smem:[#allocation5_spill]] %s2715_s0 }
   0x2   :  { %16 = vsyncpa [#allocation3], 0 }
   0x3   :  { %18 = vsyncpa [#allocation3 + $0x1], 0  ;;  %s2265_s17 = smov 0   ;;  %s2267_s18 = smov 0  }
   0x4   :  { %s2269_s19 = smov 0   ;;  %s2271_s20 = smov 0  }
   0x5 LB: > { %s2286_s21 = sadd.s32 4294967295, %s2194_s20   ;;  %s1699_s22 = sadd.s32 4294967294, %s2194_s20   ;;  %s2194_s20 = sphi %s2271_s20, %s2737_s20   ;;  %s2190_s19 = sphi %s2269_s19, %s2736_s19   ;;  %s2186_s18 = sphi %s2267_s18, %s2735_s18   ;;  %s2182_s17 = sphi %s2265_s17, %s2734_s17  }
   0x6   : > { %s2290_s23 = sadd.s32 1, %s2194_s20   ;;  %s267_s24 = sadd.s32 1, %s2190_s19 }
   0x7   : > { %s264_s25 = ssub.s32 %s2194_s20, %s2290_s23  ;;  %p277_p0 = scmp.ne.s32.totalorder %s2190_s19, %s2186_s18 }
   0x8   : > { %p265_p1 = scmp.eq.s32.totalorder %s264_s25, 0  ;;  %p278_p2 = scmp.eq.s32.totalorder %s2286_s21, 1 }
   0x9   : > { %p283_p3 = scmp.ne.s32.totalorder %s2186_s18, %s2182_s17  ;;  %p284_p4 = scmp.eq.s32.totalorder %s1699_s22, 1 }
   0xa   : > { %s2301_s26 = scalar_select %p265_p1, %s2190_s19, %s267_s24  }
   0xb   : > { %p2303_p5 = por %p278_p2, %p277_p0  ;;  %p2307_p6 = por %p284_p4, %p283_p3 }
   0xc   : > { %p1702_p7 = scmp.ge.s32.totalorder %s2194_s20, 1  ;;  %p339_p8 = scmp.lt.s32.totalorder %s2194_s20, 3 }
   0xe   : > { %p340_p9 = pnand %p1702_p7, %p339_p8 }
   0xf   : > { %v2068_v0 = vld [vmem:[%s2722_s7] sm:$0xff] (!%p340_p9)   ;;  %v2196_v1 = vmov (!%p340_p9), 0.0   ;;  %v2069_v2 = vld [vmem:[%s2722_s7 + $0x8] sm:$0xff] (!%p340_p9)   ;;  %vm2197_vm0 = vmmov (!%p340_p9), 0   ;;  %v2070_v3 = vld [vmem:[%s2722_s7 + $0x10] sm:$0xff] (!%p340_p9)   ;;  %p378_p10 = scmp.lt.s32.totalorder (!%p340_p9), %s2286_s21, 1 }
  0x10   : > { %343 = sbr.rel (%p340_p9) target bundleno = 2815 (0xaff), region = 64  ;;  %1861 = vmatprep.subr.bf16.mxu1 (!%p340_p9), %v2196_v1  ;;  %1841 = vmatprep.subr.bf16.mxu0 (!%p340_p9), %v2196_v1  ;;  %v2076_v4 = vld [vmem:[%s2719_s4] sm:$0xff] (!%p340_p9)   ;;  %v2071_v5 = vld [vmem:[%s2722_s7 + $0x18] sm:$0xff] (!%p340_p9)   ;;  %v2077_v6 = vld [vmem:[%s2719_s4 + $0x8] sm:$0xff] (!%p340_p9)   ;;  %vm737_vm1 = vcmask (!%p340_p9), 1043456   ;;  %s2732_s0 = sld [smem:[#allocation5_spill]] (!%p340_p9) }
  0x11   : > { %1862 = vmatpush3.bf16.msra.mxu1 (!%p340_p9), %v2068_v0  ;;  %1877 = vmatprep.mubr.msk.bf16.mxu1 (!%p340_p9), %vm2197_vm0, %v2196_v1  ;;  %v2072_v7 = vld [vmem:[%s2722_s7 + $0x20] sm:$0xff] (!%p340_p9)   ;;  %v2078_v8 = vld [vmem:[%s2719_s4 + $0x10] sm:$0xff] (!%p340_p9)   ;;  %v2073_v9 = vld [vmem:[%s2722_s7 + $0x28] sm:$0xff] (!%p340_p9)   ;;  %s2727_s29 = smov (!%p340_p9), 32   ;;  %vm733_vm2 = vcmask (!%p340_p9), 64512   ;;  %s2199_s22 = smov (!%p340_p9), 16  }
  0x12   : > { %1863 = vmatprep.subr.bf16.mxu1 (!%p340_p9), %v2196_v1  ;;  %1857 = vmatprep.mubr.msk.bf16.mxu0 (!%p340_p9), %vm2197_vm0, %v2196_v1  ;;  %v732_v10 = vld [vmem:[%s2723_s8] sm:$0xf] (!%p340_p9)  ;;  %v2079_v11 = vld [vmem:[%s2719_s4 + $0x18] sm:$0xff] (!%p340_p9)   ;;  %v2074_v13 = vld [vmem:[%s2722_s7 + $0x30] sm:$0xff] (!%p340_p9)   ;;  %s2200_s30 = smov (!%p340_p9), 112   ;;  %s2201_s15 = smov (!%p340_p9), 64  }
  0x13   : > { %1842 = vmatpush3.bf16.msra.mxu0 (!%p340_p9), %v2076_v4  ;;  %v739_v12 = vsel (!%p340_p9), %vm737_vm1, %v732_v10, 0  ;;  %v2080_v14 = vld [vmem:[%s2719_s4 + $0x20] sm:$0xff] (!%p340_p9)   ;;  %v2075_v15 = vld [vmem:[%s2722_s7 + $0x38] sm:$0xff] (!%p340_p9)   ;;  %v2081_v16 = vld [vmem:[%s2719_s4 + $0x28] sm:$0xff] (!%p340_p9)   ;;  %vm1017_vm3 = vcmask (!%p340_p9), 261120   ;;  %vm1015_vm4 = vcmask (!%p340_p9), 130048  }
  0x14   : > { %1843 = vmatprep.subr.bf16.mxu0 (!%p340_p9), %v2196_v1  ;;  %v2082_v18 = vld [vmem:[%s2719_s4 + $0x30] sm:$0xff] (!%p340_p9)   ;;  %v2083_v19 = vld [vmem:[%s2719_s4 + $0x38] sm:$0xff] (!%p340_p9)   ;;  %v2086_v20 = vld [vmem:[%s2724_s9] sm:$0xff] (!%p340_p9)   ;;  %vm1019_vm5 = vcmask (!%p340_p9), 392192   ;;  %vm1021_vm6 = vcmask (!%p340_p9), 523264   ;;  %vm1025_vm7 = vcmask (!%p340_p9), 785408  }
  0x15   : > { %1864 = vmatpush3.bf16.msra.mxu1 (!%p340_p9), %v2069_v2  ;;  %v2088_v21 = vld [vmem:[%s2724_s9 + $0x8] sm:$0xff] (!%p340_p9)   ;;  %v2090_v22 = vld [vmem:[%s2724_s9 + $0x10] sm:$0xff] (!%p340_p9)   ;;  %v2092_v23 = vld [vmem:[%s2724_s9 + $0x18] sm:$0xff] (!%p340_p9)   ;;  %vm1023_vm8 = vcmask (!%p340_p9), 654336   ;;  %vm1027_vm9 = vcmask (!%p340_p9), 916480  }
  0x16   : > { %1865 = vmatprep.subr.bf16.mxu1 (!%p340_p9), %v2196_v1  ;;  %v2094_v24 = vld [vmem:[%s2724_s9 + $0x20] sm:$0xff] (!%p340_p9)   ;;  %v2096_v25 = vld [vmem:[%s2724_s9 + $0x28] sm:$0xff] (!%p340_p9)   ;;  %v2098_v26 = vld [vmem:[%s2724_s9 + $0x30] sm:$0xff] (!%p340_p9)  }
  0x17   : > { %s379_s12 = scalar_select %p378_p10, %s2286_s21, 1  ;;  %1844 = vmatpush3.bf16.msra.mxu0 %v2077_v6  ;;  %v2099_v27 = vld [vmem:[%s2724_s9 + $0x38] sm:$0xff]   ;;  %v2435_v28 = vld [vmem:[%s2716_s1] sm:$0xff]  ;;  %v2085_v36 = vld [vmem:[%s2718_s3 + $0x8] sm:$0xff]  }
  0x18   : > { %1845 = vmatprep.subr.bf16.mxu0 %v2196_v1  ;;  %v2440_v29 = vld [vmem:[%s2717_s2] sm:$0xff]  ;;  %1030 = vrot.lane.b32.xlu0 %v2435_v28, %s2727_s29  ;;  %v2087_v37 = vld [vmem:[%s2718_s3 + $0x10] sm:$0xff]   ;;  %v2089_v42 = vld [vmem:[%s2718_s3 + $0x18] sm:$0xff]  }
  0x19   : > { %1866 = vmatpush3.bf16.msra.mxu1 %v2070_v3  ;;  %s1704_s25 = sshll.u32 %s379_s12, 2  ;;  %1043 = vrot.lane.b32.xlu1 %v2440_v29, %s2727_s29  ;;  %v2084_v31 = vld [vmem:[%s2718_s3] sm:$0xff]   ;;  %v2093_v45 = vld [vmem:[%s2718_s3 + $0x28] sm:$0xff]   ;;  %v2095_v46 = vld [vmem:[%s2718_s3 + $0x30] sm:$0xff]  }
  0x1a   : > { %1867 = vmatprep.subr.bf16.mxu1 %v2196_v1  ;;  %s381_s14 = scalar_lea.vmem %s2732_s0, %s1704_s25  ;;  %v2091_v44 = vld [vmem:[%s2718_s3 + $0x20] sm:$0xff]   ;;  %s2202_s25 = smov 96   ;;  %v2097_v47 = vld [vmem:[%s2718_s3 + $0x38] sm:$0xff]  }
  0x1b   : > { %1846 = vmatpush3.bf16.msra.mxu0 %v2078_v8  ;;  %v2381_v17 = vld [vmem:[%s381_s14] sm:$0xf]  ;;  %v2102_v8 = vld [vmem:[%s2720_s5 + $0x10] sm:$0xff]  }
  0x1c   : > { %1847 = vmatprep.subr.bf16.mxu0 %v2196_v1  ;;  %v870_v48 = vld [vmem:[%s2725_s10] sm:$0xf] }
  0x1d   : > { %1868 = vmatpush3.bf16.msra.mxu1 %v2071_v5  ;;  %v875_v50 = vsel %vm737_vm1, %v870_v48, 0  ;;  %v2100_v3 = vld [vmem:[%s2720_s5] sm:$0xff]   ;;  %v2101_v5 = vld [vmem:[%s2720_s5 + $0x8] sm:$0xff]  }
  0x1e   : > { %1869 = vmatprep.subr.bf16.mxu1 %v2196_v1 }
  0x1f   : > { %1848 = vmatpush3.bf16.msra.mxu0 %v2079_v11 }
  0x20   : > { %1849 = vmatprep.subr.bf16.mxu0 %v2196_v1 }
  0x21   : > { %1870 = vmatpush3.bf16.msra.mxu1 %v2072_v7 }
  0x22   : > { %1871 = vmatprep.subr.bf16.mxu1 %v2196_v1 }
  0x23   : > { %1850 = vmatpush3.bf16.msra.mxu0 %v2080_v14  ;;  %v2104_v14 = vld [vmem:[%s2720_s5 + $0x20] sm:$0xff]  }
  0x24   : > { %1851 = vmatprep.subr.bf16.mxu0 %v2196_v1 }
  0x25   : > { %1872 = vmatpush3.bf16.msra.mxu1 %v2073_v9  ;;  %v2103_v9 = vld [vmem:[%s2720_s5 + $0x18] sm:$0xff]  }
  0x26   : > { %1873 = vmatprep.subr.bf16.mxu1 %v2196_v1 }
  0x27   : > { %1852 = vmatpush3.bf16.msra.mxu0 %v2081_v16  ;;  %v2105_v16 = vld [vmem:[%s2720_s5 + $0x28] sm:$0xff]  }
  0x28   : > { %1853 = vmatprep.subr.bf16.mxu0 %v2196_v1 }
  0x29   : > { %1874 = vmatpush3.bf16.msra.mxu1 %v2074_v13 }
  0x2a   : > { %1875 = vmatprep.subr.bf16.mxu1 %v2196_v1 }
  0x2b   : > { %1854 = vmatpush3.bf16.msra.mxu0 %v2082_v18  ;;  %v2106_v18 = vld [vmem:[%s2720_s5 + $0x30] sm:$0xff]  }
  0x2c   : > { %1855 = vmatprep.subr.bf16.mxu0 %v2196_v1 }
  0x2d   : > { %1876 = vmatpush3.bf16.msra.mxu1 %v2075_v15 }
  0x2e   : > { %1901 = vmatprep.subr.bf16.mxu1 %v2196_v1 }
  0x2f   : > { %1856 = vmatpush3.bf16.msra.mxu0 %v2083_v19 }
  0x30   : > { %1878 = vmatmul.mubr.bf16.vlgmr.msra.gmra.mrb[0].mxu1 %v2381_v17  ;;  %1881 = vmatprep.subr.bf16.mxu0 %v2196_v1 }
  0x31   : > { %1902 = vmatpush3.bf16.msra.mxu1 %v739_v12  ;;  %1903 = vmatprep.mubr.msk.bf16.mxu1 %vm2197_vm0, %v2196_v1 }
  0x32   : > { %1907 = vmatprep.subr.bf16.mxu1 %v2196_v1  ;;  %1858 = vmatmul.mubr.bf16.vlgmr.msra.gmra.mrb[0].mxu0 %v2381_v17 }
  0x33   : > { %1897 = vmatprep.mubr.msk.bf16.mxu0 %vm2197_vm0, %v2196_v1  ;;  %1882 = vmatpush3.bf16.msra.mxu0 %v2086_v20 }
  0x34   : > { %1883 = vmatprep.subr.bf16.mxu0 %v2196_v1 }
  0x37   : > { %1884 = vmatpush3.bf16.msra.mxu0 %v2088_v21 }
  0x38   : > { %1885 = vmatprep.subr.bf16.mxu0 %v2196_v1 }
  0x3b   : > { %1886 = vmatpush3.bf16.msra.mxu0 %v2090_v22 }
  0x3c   : > { %1887 = vmatprep.subr.bf16.mxu0 %v2196_v1 }
  0x3f   : > { %1888 = vmatpush3.bf16.msra.mxu0 %v2092_v23 }
  0x40   : > { %1889 = vmatprep.subr.bf16.mxu0 %v2196_v1 }
  0x43   : > { %1890 = vmatpush3.bf16.msra.mxu0 %v2094_v24  ;;  %v2107_v24 = vld [vmem:[%s2720_s5 + $0x38] sm:$0xff]  }
  0x44   : > { %1891 = vmatprep.subr.bf16.mxu0 %v2196_v1 }
  0x47   : > { %1892 = vmatpush3.bf16.msra.mxu0 %v2096_v25 }
  0x48   : > { %1893 = vmatprep.subr.bf16.mxu0 %v2196_v1 }
  0x4b   : > { %1894 = vmatpush3.bf16.msra.mxu0 %v2098_v26 }
  0x4c   : > { %1895 = vmatprep.subr.bf16.mxu0 %v2196_v1 }
  0x4f   : > { %1896 = vmatpush3.bf16.msra.mxu0 %v2099_v27 }
  0x50   : > { %1933 = vmatprep.subr.bf16.mxu0 %v2196_v1 }
  0x52   : > { %1898 = vmatmul.mubr.bf16.vlgmr.msra.gmra.mrb[4].mxu0 %v2381_v17 }
  0x53   : > { %1949 = vmatprep.mubr.msk.bf16.mxu0 %vm2197_vm0, %v2196_v1  ;;  %1934 = vmatpush3.bf16.msra.mxu0 %v2100_v3 }
  0x54   : > { %1935 = vmatprep.subr.bf16.mxu0 %v2196_v1 }
  0x57   : > { %1936 = vmatpush3.bf16.msra.mxu0 %v2101_v5 }
  0x58   : > { %1937 = vmatprep.subr.bf16.mxu0 %v2196_v1 }
  0x5b   : > { %1938 = vmatpush3.bf16.msra.mxu0 %v2102_v8 }
  0x5c   : > { %1939 = vmatprep.subr.bf16.mxu0 %v2196_v1 }
  0x5f   : > { %1940 = vmatpush3.bf16.msra.mxu0 %v2103_v9 }
  0x60   : > { %1941 = vmatprep.subr.bf16.mxu0 %v2196_v1 }
  0x63   : > { %1942 = vmatpush3.bf16.msra.mxu0 %v2104_v14 }
  0x64   : > { %1943 = vmatprep.subr.bf16.mxu0 %v2196_v1 }
  0x67   : > { %1944 = vmatpush3.bf16.msra.mxu0 %v2105_v16 }
  0x68   : > { %1945 = vmatprep.subr.bf16.mxu0 %v2196_v1 }
  0x6b   : > { %1946 = vmatpush3.bf16.msra.mxu0 %v2106_v18 }
  0x6c   : > { %1947 = vmatprep.subr.bf16.mxu0 %v2196_v1 }
  0x6f   : > { %1948 = vmatpush3.bf16.msra.mxu0 %v2107_v24 }
  0x70   : > { %1989 = vmatprep.subr.bf16.mxu0 %v2196_v1 }
  0x72   : > { %1950 = vmatmul.mubr.bf16.vlgmr.msra.gmra.mrb[8].mxu0 %v2381_v17 }
  0x73   : > { %1991 = vmatprep.mubr.msk.bf16.mxu0 %vm2197_vm0, %v2196_v1 }
  0x8a   : > { %v1031_v49 = vpop.permute.xlu0 %1030 }
  0x8b   : > { %v1044_v55 = vpop.permute.xlu1 %1043  ;;  %v1039_v59 = vsel %vm1017_vm3, %v2435_v28, %v1031_v49 }
  0x8c   : > { %v2507_v61 = vsel %vm1017_vm3, %v2440_v29, %v1044_v55 }
 0x103   : > { %v620_v30 = vpop.f32.mrb[0].mxu1 }
 0x104   : > { %v626_v32 = vpack.c.bf16 %v620_v30, %v620_v30  ;;  %v1879_v33 = vpop.f32.mrb[1].mxu1 }
 0x105   : > { %v623_v34 = vpop.f32.mrb[2].mxu1  ;;  %v500_v38 = vpop.f32.mrb[0].mxu0 }
 0x106   : > { %v1880_v35 = vpop.f32.mrb[3].mxu1  ;;  %1904 = vmatmul.mubr.msk.bf16.vlgmr.msra.gmra.mrb[4].mxu1 %vm733_vm2, %v626_v32  ;;  %v1060_v39 = vsub.f32 0.0, %v500_v38  ;;  %1066 = vrot.lane.b32.xlu0 %v500_v38, %s2199_s22  ;;  %v1859_v40 = vpop.f32.mrb[1].mxu0  ;;  %v1072_v62 = vmul.f32 %v1039_v59, %v500_v38 }
 0x107   : > { %1908 = vmatpush3.bf16.msra.mxu1 %v2084_v31  ;;  %1923 = vmatprep.mubr.msk.bf16.mxu1 %vm2197_vm0, %v2196_v1  ;;  %v503_v41 = vpop.f32.mrb[2].mxu0 }
 0x108   : > { %1909 = vmatprep.subr.bf16.mxu1 %v2196_v1  ;;  %v1860_v43 = vpop.f32.mrb[3].mxu0 }
 0x10a   : > { %1062 = vrot.lane.b32.xlu0 %v1060_v39, %s2200_s30 }
 0x10b   : > { %1910 = vmatpush3.bf16.msra.mxu1 %v2085_v36 }
 0x10c   : > { %1911 = vmatprep.subr.bf16.mxu1 %v2196_v1 }
 0x10e   : > { %1033 = vrot.lane.b32.xlu0 %v2435_v28, %s2201_s15 }
 0x10f   : > { %1912 = vmatpush3.bf16.msra.mxu1 %v2087_v37 }
 0x110   : > { %1913 = vmatprep.subr.bf16.mxu1 %v2196_v1 }
 0x112   : > { %1036 = vrot.lane.b32.xlu0 %v2435_v28, %s2202_s25 }
 0x113   : > { %1914 = vmatpush3.bf16.msra.mxu1 %v2089_v42 }
 0x114   : > { %1915 = vmatprep.subr.bf16.mxu1 %v2196_v1 }
 0x117   : > { %1916 = vmatpush3.bf16.msra.mxu1 %v2091_v44 }
 0x118   : > { %1917 = vmatprep.subr.bf16.mxu1 %v2196_v1 }
 0x11b   : > { %1918 = vmatpush3.bf16.msra.mxu1 %v2093_v45 }
 0x11c   : > { %1919 = vmatprep.subr.bf16.mxu1 %v2196_v1 }
 0x11f   : > { %1920 = vmatpush3.bf16.msra.mxu1 %v2095_v46 }
 0x120   : > { %1921 = vmatprep.subr.bf16.mxu1 %v2196_v1 }
 0x123   : > { %1922 = vmatpush3.bf16.msra.mxu1 %v2097_v47 }
 0x124   : > { %1927 = vmatprep.subr.bf16.mxu1 %v2196_v1 }
 0x125   : > { %v725_v52 = vpop.f32.mrb[4].mxu0 }
 0x126   : > { %1924 = vmatmul.mubr.bf16.vlgmr.msra.gmra.mrb[8].mxu1 %v2381_v17  ;;  %v731_v53 = vpack.c.bf16 %v725_v52, %v725_v52  ;;  %v1899_v54 = vpop.f32.mrb[5].mxu0 }
 0x127   : > { %1929 = vmatprep.mubr.msk.bf16.mxu1 %vm2197_vm0, %v2196_v1  ;;  %1928 = vmatpush3.bf16.msra.mxu1 %v875_v50  ;;  %v728_v56 = vpop.f32.mrb[6].mxu0 }
 0x128   : > { %1953 = vmatprep.subr.bf16.mxu1 %v2196_v1  ;;  %v1900_v57 = vpop.f32.mrb[7].mxu0 }
 0x12e   : > { %1930 = vmatmul.mubr.msk.bf16.vlgmr.msra.gmra.mrb[12].mxu1 %vm733_vm2, %v731_v53 }
 0x12f   : > { %1955 = vmatprep.mubr.msk.bf16.mxu1 %vm2197_vm0, %v2196_v1 }
 0x145   : > { %v1000_v52 = vpop.f32.mrb[8].mxu0 }
 0x146   : > { %v1951_v54 = vpop.f32.mrb[9].mxu0 }
 0x147   : > { %v1003_v55 = vpop.f32.mrb[10].mxu0 }
 0x148   : > { %v1952_v57 = vpop.f32.mrb[11].mxu0 }
 0x178   : > { %v1067_v51 = vpop.permute.xlu0 %1066 }
 0x17c   : > { %v1063_v58 = vpop.permute.xlu0 %1062 }
 0x17d   : > { %v1069_v60 = vsel %vm1015_vm4, %v1063_v58, %v1067_v51 }
 0x17e   : > { %v1070_v63 = vsel %vm1017_vm3, %v1069_v60, %v1063_v58 }
 0x17f   : > { %v1071_v0 = vsel %vm1019_vm5, %v1070_v63, %v1067_v51 }
 0x180   : > { %v1073_v2 = vmul.f32 %v1071_v0, %v2507_v61  ;;  %v1034_v15 = vpop.permute.xlu0 %1033 }
 0x181   : > { %v1040_v19 = vsel %vm1021_vm6, %v1039_v59, %v1034_v15  ;;  %v1077_v59 = vlaneseq }
 0x182   : > { %v1074_v4 = vadd.f32 %v1073_v2, %v1072_v62  ;;  %v2203_v62 = vmov -1e+30  }
 0x183   : > { %v1078_v60 = vshrl.u32 %v1077_v59, 7 }
 0x184   : > { %v2518_v6 = vpack.c.bf16 %v1074_v4, %v1074_v4  ;;  %v1037_v20 = vpop.permute.xlu0 %1036 }
 0x185   : > { %v1041_v23 = vsel %vm1025_vm7, %v1040_v19, %v1037_v20 }
 0x186   : > { %v2523_v7 = vsel %vm1017_vm3, %v2518_v6, 0 }
 0x187   : > { %1954 = vmatpush3.bf16.xpose.msra.mxu1 %v2523_v7 }
 0x188   : > { %1959 = vmatprep.subr.bf16.mxu1 %v2196_v1 }
 0x1d9   : > { %v775_v10 = vpop.f32.mrb[4].mxu1 }
 0x1da   : > { %v1905_v11 = vpop.f32.mrb[5].mxu1  ;;  %v781_v21 = vmul.f32 2.0, %v775_v10 }
 0x1db   : > { %v778_v12 = vpop.f32.mrb[6].mxu1 }
 0x1dc   : > { %v1906_v13 = vpop.f32.mrb[7].mxu1 }
 0x1f9   : > { %v864_v22 = vpop.f32.mrb[8].mxu1 }
 0x1fa   : > { %v865_v25 = vadd.f32 %v864_v22, %v781_v21  ;;  %v1925_v26 = vpop.f32.mrb[9].mxu1 }
 0x1fb   : > { %v867_v27 = vpop.f32.mrb[10].mxu1 }
 0x1fc   : > { %v1055_v28 = vmul.f32 %v1041_v23, %v865_v25  ;;  %1012 = vrot.lane.b32.xlu1 %v865_v25, %s2199_s22  ;;  %v1926_v30 = vpop.f32.mrb[11].mxu1  ;;  %v1006_v31 = vsub.f32 0.0, %v865_v25  ;;  %s2733_s22 = smov 32  }
 0x200   : > { %1008 = vrot.lane.b32.xlu1 %v1006_v31, %s2200_s30 }
 0x201   : > { %v911_v32 = vpop.f32.mrb[12].mxu1 }
 0x202   : > { %v1931_v33 = vpop.f32.mrb[13].mxu1  ;;  %v917_v51 = vmul.f32 2.0, %v911_v32 }
 0x203   : > { %v914_v34 = vpop.f32.mrb[14].mxu1 }
 0x204   : > { %1046 = vrot.lane.b32.xlu1 %v2440_v29, %s2201_s15  ;;  %v1932_v35 = vpop.f32.mrb[15].mxu1  ;;  %v1001_v53 = vadd.f32 %v1000_v52, %v917_v51 }
 0x206   : > { %v2574_v56 = vpack.c.bf16 %v1001_v53, %v1001_v53 }
 0x208   : > { %1049 = vrot.lane.b32.xlu1 %v2440_v29, %s2202_s25  ;;  %v1145_v58 = vsel %vm737_vm1, %v2574_v56, 0 }
 0x26e   : > { %v1013_v36 = vpop.permute.xlu1 %1012 }
 0x272   : > { %v1009_v37 = vpop.permute.xlu1 %1008 }
 0x273   : > { %v1016_v38 = vsel %vm1015_vm4, %v1009_v37, %v1013_v36 }
 0x274   : > { %v1018_v17 = vsel %vm1017_vm3, %v1016_v38, %v1009_v37 }
 0x275   : > { %v1020_v39 = vsel %vm1019_vm5, %v1018_v17, %v1013_v36 }
 0x276   : > { %v1022_v40 = vsel %vm1021_vm6, %v1020_v39, %v1009_v37  ;;  %v1047_v41 = vpop.permute.xlu1 %1046 }
 0x277   : > { %v1024_v42 = vsel %vm1023_vm8, %v1022_v40, %v1013_v36  ;;  %v1053_v29 = vsel %vm1021_vm6, %v2507_v61, %v1047_v41  ;;  %v1080_v61 = vand.u32 127, %v1077_v59 }
 0x278   : > { %v1026_v43 = vsel %vm1025_vm7, %v1024_v42, %v1009_v37 }
 0x279   : > { %v1028_v45 = vsel %vm1027_vm9, %v1026_v43, %v1013_v36  ;;  %vm1081_vm10 = vcmp.ge.s32.totalorder %v1078_v60, %v1080_v61 }
 0x27a   : > { %v1050_v44 = vpop.permute.xlu1 %1049  ;;  %v2579_v63 = vsel %vm1081_vm10, 0.0, %v2203_v62 }
 0x27b   : > { %v1054_v46 = vsel %vm1025_vm7, %v1053_v29, %v1050_v44 }
 0x27c   : > { %v1056_v47 = vmul.f32 %v1054_v46, %v1028_v45 }
 0x27e   : > { %v1057_v48 = vadd.f32 %v1056_v47, %v1055_v28 }
 0x280   : > { %v1058_v49 = vmul.f32 0.17677669, %v1057_v48 }
 0x282   : > { %v1059_v50 = vpack.c.bf16 %v1058_v49, %v1058_v49 }
 0x284   : > { %1956 = vmatmul.mubr.msk.bf16.vlgmr.msra.gmra.mrb[16].mxu1 %vm1017_vm3, %v1059_v50 }
 0x285   : > { %1961 = vmatprep.mubr.msk.bf16.mxu1 %vm2197_vm0, %v2196_v1  ;;  %1960 = vmatpush3.bf16.msra.mxu1 %v1145_v58 }
 0x286   : > { %1965 = vmatprep.subr.bf16.mxu1 %v2196_v1 }
 0x357   : > { %v1123_v0 = vpop.f32.mrb[16].mxu1 }
 0x358   : > { %v1124_v2 = vadd.f32 %v1123_v0, %v2579_v63  ;;  %v1957_v3 = vpop.f32.mrb[17].mxu1 }
 0x359   : > { %v1126_v4 = vpop.f32.mrb[18].mxu1 }
 0x35a   : > { %v1958_v5 = vpop.f32.mrb[19].mxu1  ;;  %v1129_v8 = vsel %vm733_vm2, %v1124_v2, -inf }
 0x35b   : > { %1130 = vmax.xlane.f32.xlu0 %v1129_v8 }
 0x371   : > { %1189 = vrot.lane.b32.xlu0 %v1059_v50, %s2202_s25 }
 0x375   : > { %1290 = vrot.lane.b32.xlu0 %v1059_v50, %s2201_s15 }
 0x379   : > { %1403 = vrot.lane.b32.xlu0 %v1059_v50, %s2733_s22 }
 0x3e8   : > { %v1131_v9 = vpop.xlane.xlu0 %1130 }
 0x3e9   : > { %v1132_v10 = vsub.f32 %v1124_v2, %v1131_v9 }
 0x3eb   : > { %v1133_v11 = vmul.f32 1.442695, %v1132_v10 }
 0x3ec   : > { %v1190_v19 = vpop.permute.xlu0 %1189 }
 0x3ed   : > { %2116 = vpow2.f32 %v1133_v11 }
 0x3f0   : > { %v1291_v38 = vpop.permute.xlu0 %1290 }
 0x3f4   : > { %v1404_v39 = vpop.permute.xlu0 %1403 }
 0x3f7   : > { %v2117_v12 = vpop.eup %2116 }
 0x3f8   : > { %v1135_v13 = vsel %vm733_vm2, %v2117_v12, 0.0 }
 0x3f9   : > { %1136 = vadd.xlane.f32.xlu1 %v1135_v13 }
 0x486   : > { %v1137_v14 = vpop.xlane.xlu1 %1136 }
 0x487   : > { %2118 = vrcp.f32 %v1137_v14 }
 0x491   : > { %v2119_v15 = vpop.eup %2118 }
 0x492   : > { %v1139_v16 = vmul.f32 %v2119_v15, %v2117_v12 }
 0x494   : > { %v1140_v18 = vpack.c.bf16 %v1139_v16, %v1139_v16  ;;  %v2108_v16 = vld [vmem:[%s2721_s6] sm:$0xff]  }
 0x496   : > { %1962 = vmatmul.mubr.msk.bf16.vlgmr.msra.gmra.mrb[20].mxu1 %vm733_vm2, %v1140_v18  ;;  %v2109_v18 = vld [vmem:[%s2721_s6 + $0x8] sm:$0xff]  }
 0x497   : > { %1966 = vmatpush3.bf16.xpose.msra.mxu1 %v2523_v7  ;;  %1967 = vmatprep.mubr.msk.bf16.mxu1 %vm2197_vm0, %v2196_v1 }
 0x498   : > { %1971 = vmatprep.subr.bf16.mxu1 %v2196_v1 }
 0x49e   : > { %1968 = vmatmul.mubr.msk.bf16.vlgmr.msra.gmra.mrb[24].mxu1 %vm1017_vm3, %v1190_v19  ;;  %v2110_v19 = vld [vmem:[%s2721_s6 + $0x10] sm:$0xff]  }
 0x49f   : > { %1972 = vmatpush3.bf16.msra.mxu1 %v1145_v58  ;;  %1973 = vmatprep.mubr.msk.bf16.mxu1 %vm2197_vm0, %v2196_v1 }
 0x4a0   : > { %1977 = vmatprep.subr.bf16.mxu1 %v2196_v1 }
 0x569   : > { %v2596_v20 = vpop.f32.mrb[20].mxu1 }
 0x56a   : > { %v1963_v21 = vpop.f32.mrb[21].mxu1 }
 0x56b   : > { %v1184_v22 = vpop.f32.mrb[22].mxu1  ;;  %v2111_v21 = vld [vmem:[%s2721_s6 + $0x18] sm:$0xff]  }
 0x56c   : > { %v1964_v23 = vpop.f32.mrb[23].mxu1  ;;  %v2112_v22 = vld [vmem:[%s2721_s6 + $0x20] sm:$0xff]  }
 0x56d   : > { %v2113_v23 = vld [vmem:[%s2721_s6 + $0x28] sm:$0xff]  }
 0x571   : > { %v1228_v7 = vpop.f32.mrb[24].mxu1 }
 0x572   : > { %v1229_v24 = vadd.f32 %v1228_v7, %v2579_v63  ;;  %v1969_v25 = vpop.f32.mrb[25].mxu1  ;;  %v2114_v7 = vld [vmem:[%s2721_s6 + $0x30] sm:$0xff]  }
 0x573   : > { %v1231_v26 = vpop.f32.mrb[26].mxu1 }
 0x574   : > { %v1970_v27 = vpop.f32.mrb[27].mxu1  ;;  %v1234_v28 = vsel %vm733_vm2, %v1229_v24, -inf }
 0x575   : > { %1235 = vmax.xlane.f32.xlu1 %v1234_v28 }
 0x602   : > { %v1236_v30 = vpop.xlane.xlu1 %1235 }
 0x603   : > { %v1237_v31 = vsub.f32 %v1229_v24, %v1236_v30  ;;  %v2115_v24 = vld [vmem:[%s2721_s6 + $0x38] sm:$0xff]  }
 0x605   : > { %v1238_v32 = vmul.f32 1.442695, %v1237_v31 }
 0x607   : > { %2120 = vpow2.f32 %v1238_v32 }
 0x611   : > { %v2121_v33 = vpop.eup %2120 }
 0x612   : > { %v1240_v34 = vsel %vm733_vm2, %v2121_v33, 0.0 }
 0x613   : > { %1241 = vadd.xlane.f32.xlu1 %v1240_v34 }
 0x624   : > { %1293 = vrot.lane.b32.xlu1 %v2518_v6, %s2202_s25 }
 0x6a0   : > { %v1242_v35 = vpop.xlane.xlu1 %1241 }
 0x6a1   : > { %2122 = vrcp.f32 %v1242_v35 }
 0x6a4   : > { %v1294_v36 = vpop.permute.xlu1 %1293 }
 0x6a5   : > { %v1299_v37 = vsel %vm1017_vm3, %v1294_v36, 0 }
 0x6a6   : > { %1990 = vmatpush3.bf16.xpose.msra.mxu0 %v1299_v37 }
 0x6a7   : > { %2001 = vmatprep.subr.bf16.mxu0 %v2196_v1 }
 0x6ab   : > { %v2123_v17 = vpop.eup %2122 }
 0x6ac   : > { %v1244_v40 = vmul.f32 %v2123_v17, %v2121_v33 }
 0x6ad   : > { %1992 = vmatmul.mubr.msk.bf16.vlgmr.msra.gmra.mrb[12].mxu0 %vm1017_vm3, %v1404_v39 }
 0x6ae   : > { %v1245_v41 = vpack.c.bf16 %v1244_v40, %v1244_v40  ;;  %2017 = vmatprep.mubr.msk.bf16.mxu0 %vm2197_vm0, %v2196_v1  ;;  %2002 = vmatpush3.bf16.msra.mxu0 %v2108_v16 }
 0x6af   : > { %2003 = vmatprep.subr.bf16.mxu0 %v2196_v1 }
 0x6b0   : > { %1974 = vmatmul.mubr.msk.bf16.vlgmr.msra.gmra.mrb[28].mxu1 %vm733_vm2, %v1245_v41 }
 0x6b1   : > { %1978 = vmatpush3.bf16.xpose.msra.mxu1 %v1299_v37  ;;  %1979 = vmatprep.mubr.msk.bf16.mxu1 %vm2197_vm0, %v2196_v1 }
 0x6b2   : > { %1983 = vmatprep.subr.bf16.mxu1 %v2196_v1  ;;  %2004 = vmatpush3.bf16.msra.mxu0 %v2109_v18 }
 0x6b3   : > { %2005 = vmatprep.subr.bf16.mxu0 %v2196_v1 }
 0x6b6   : > { %2006 = vmatpush3.bf16.msra.mxu0 %v2110_v19 }
 0x6b7   : > { %2007 = vmatprep.subr.bf16.mxu0 %v2196_v1 }
 0x6b8   : > { %1980 = vmatmul.mubr.msk.bf16.vlgmr.msra.gmra.mrb[32].mxu1 %vm1017_vm3, %v1291_v38 }
 0x6b9   : > { %1985 = vmatprep.mubr.msk.bf16.mxu1 %vm2197_vm0, %v2196_v1 }
 0x6ba   : > { %2008 = vmatpush3.bf16.msra.mxu0 %v2111_v21 }
 0x6bb   : > { %2009 = vmatprep.subr.bf16.mxu0 %v2196_v1 }
 0x6be   : > { %2010 = vmatpush3.bf16.msra.mxu0 %v2112_v22 }
 0x6bf   : > { %2011 = vmatprep.subr.bf16.mxu0 %v2196_v1 }
 0x6c2   : > { %2012 = vmatpush3.bf16.msra.mxu0 %v2113_v23 }
 0x6c3   : > { %2013 = vmatprep.subr.bf16.mxu0 %v2196_v1 }
 0x6c6   : > { %2014 = vmatpush3.bf16.msra.mxu0 %v2114_v7 }
 0x6c7   : > { %2015 = vmatprep.subr.bf16.mxu0 %v2196_v1 }
 0x6ca   : > { %2016 = vmatpush3.bf16.msra.mxu0 %v2115_v24 }
 0x780   : > { %v1442_v6 = vpop.f32.mrb[12].mxu0 }
 0x781   : > { %v1443_v42 = vadd.f32 %v1442_v6, %v2579_v63  ;;  %v1993_v43 = vpop.f32.mrb[13].mxu0 }
 0x782   : > { %v1445_v29 = vpop.f32.mrb[14].mxu0 }
 0x783   : > { %v1283_v44 = vpop.f32.mrb[28].mxu1  ;;  %v1994_v45 = vpop.f32.mrb[15].mxu0  ;;  %v1448_v46 = vsel %vm733_vm2, %v1443_v42, -inf }
 0x784   : > { %v1975_v47 = vpop.f32.mrb[29].mxu1  ;;  %1449 = vmax.xlane.f32.xlu1 %v1448_v46  ;;  %v1289_v5 = vpack.c.bf16 %v1283_v44, %v1283_v44 }
 0x785   : > { %v1286_v48 = vpop.f32.mrb[30].mxu1 }
 0x786   : > { %v1976_v49 = vpop.f32.mrb[31].mxu1 }
 0x78b   : > { %v1335_v50 = vpop.f32.mrb[32].mxu1 }
 0x78c   : > { %v1336_v51 = vadd.f32 %v1335_v50, %v2579_v63  ;;  %v1981_v52 = vpop.f32.mrb[33].mxu1 }
 0x78d   : > { %v1338_v53 = vpop.f32.mrb[34].mxu1 }
 0x78e   : > { %v1982_v54 = vpop.f32.mrb[35].mxu1  ;;  %v1341_v55 = vsel %vm733_vm2, %v1336_v51, -inf }
 0x78f   : > { %1342 = vmax.xlane.f32.xlu0 %v1341_v55 }
 0x795   : > { %1354 = vrot.lane.b32.xlu1 %v2574_v56, %s2202_s25 }
 0x811   : > { %v1450_v57 = vpop.xlane.xlu1 %1449 }
 0x812   : > { %v1451_v60 = vsub.f32 %v1443_v42, %v1450_v57 }
 0x814   : > { %v1452_v63 = vmul.f32 1.442695, %v1451_v60 }
 0x815   : > { %v1355_v58 = vpop.permute.xlu1 %1354 }
 0x816   : > { %v1360_v59 = vsel %vm737_vm1, %v1355_v58, 0 }
 0x817   : > { %1984 = vmatpush3.bf16.msra.mxu1 %v1360_v59 }
 0x818   : > { %1995 = vmatprep.subr.bf16.mxu1 %v2196_v1 }
 0x81c   : > { %v1343_v61 = vpop.xlane.xlu0 %1342 }
 0x81d   : > { %v1344_v62 = vsub.f32 %v1336_v51, %v1343_v61 }
 0x81f   : > { %v1345_v0 = vmul.f32 1.442695, %v1344_v62 }
 0x821   : > { %2124 = vpow2.f32 %v1345_v0 }
 0x822   : > { %2126 = vpow2.f32 %v1452_v63 }
 0x82b   : > { %v2125_v2 = vpop.eup %2124 }
 0x82c   : > { %v1347_v3 = vsel %vm733_vm2, %v2125_v2, 0.0  ;;  %v2127_v4 = vpop.eup %2126 }
 0x82d   : > { %1348 = vadd.xlane.f32.xlu0 %v1347_v3  ;;  %v1454_v56 = vsel %vm733_vm2, %v2127_v4, 0.0 }
 0x831   : > { %1455 = vadd.xlane.f32.xlu0 %v1454_v56 }
 0x847   : > { %1505 = vrot.lane.b32.xlu0 %v1289_v5, %s2733_s22 }
 0x8ba   : > { %v1349_v8 = vpop.xlane.xlu0 %1348 }
 0x8bb   : > { %2128 = vrcp.f32 %v1349_v8 }
 0x8be   : > { %v1456_v9 = vpop.xlane.xlu0 %1455 }
 0x8bf   : > { %2130 = vrcp.f32 %v1456_v9 }
 0x8c2   : > { %v1506_v36 = vpop.permute.xlu0 %1505 }
 0x8c5   : > { %v2129_v10 = vpop.eup %2128 }
 0x8c6   : > { %v1351_v11 = vmul.f32 %v2129_v10, %v2125_v2 }
 0x8c8   : > { %v1352_v12 = vpack.c.bf16 %v1351_v11, %v1351_v11 }
 0x8c9   : > { %v2131_v13 = vpop.eup %2130 }
 0x8ca   : > { %1986 = vmatmul.mubr.msk.bf16.vlgmr.msra.gmra.mrb[36].mxu1 %vm733_vm2, %v1352_v12  ;;  %v1458_v14 = vmul.f32 %v2131_v13, %v2127_v4 }
 0x8cb   : > { %1996 = vmatpush3.bf16.msra.mxu1 %v1360_v59  ;;  %1997 = vmatprep.mubr.msk.bf16.mxu1 %vm2197_vm0, %v2196_v1  ;;  %v1187_v1 = vpack.c.bf16 %v2596_v20, %v2596_v20 }
 0x8cc   : > { %v1459_v15 = vpack.c.bf16 %v1458_v14, %v1458_v14 }
 0x8cd   : > { %v1515_v38 = vsel %vm1017_vm3, %v1187_v1, %v1506_v36 }
 0x8d2   : > { %1998 = vmatmul.mubr.msk.bf16.vlgmr.msra.gmra.mrb[40].mxu1 %vm733_vm2, %v1459_v15 }
 0x99d   : > { %v1396_v25 = vpop.f32.mrb[36].mxu1 }
 0x99e   : > { %v1402_v26 = vpack.c.bf16 %v1396_v25, %v1396_v25  ;;  %v1987_v27 = vpop.f32.mrb[37].mxu1 }
 0x99f   : > { %v1399_v28 = vpop.f32.mrb[38].mxu1 }
 0x9a0   : > { %1508 = vrot.lane.b32.xlu1 %v1402_v26, %s2201_s15  ;;  %v1988_v30 = vpop.f32.mrb[39].mxu1  ;;  %s375_s15 = sand.u32 1, %s2186_s18  }
 0x9a1   : > { %s1703_s30 = sshll.u32 %s375_s15, 3  ;;  %s1627_s14 = scalar_lea.sflag [#allocation3], %s375_s15 }
 0x9a2   : > { %s377_s16 = scalar_lea.vmem [#allocation2], %s1703_s30 }
 0x9a3   : > { %s1640_s12 = sshll.u32 %s377_s16, 4  ;;  %s2670_s12 = int_to_ptr.vmem [resolvable:$true] %s1640_s12 }
 0x9a4   : > { %s2132_s22 = scalar_lea.vmem %s2670_s12, 128 }
 0x9a5   : > { %v1497_v31 = vpop.f32.mrb[40].mxu1  ;;  %p2133_p11 = scmp.ne.s32.totalorder %s2670_s12, %s2132_s22 }
 0x9a6   : > { %v1503_v32 = vpack.c.bf16 %v1497_v31, %v1497_v31  ;;  %v1999_v33 = vpop.f32.mrb[41].mxu1 }
 0x9a7   : > { %v1500_v34 = vpop.f32.mrb[42].mxu1  ;;  %p2134_p12 = pnand %p2133_p11, %p2303_p5 }
 0x9a8   : > { %1511 = vrot.lane.b32.xlu1 %v1503_v32, %s2202_s25  ;;  %v2000_v35 = vpop.f32.mrb[43].mxu1  ;;  %s1764_s25 = sshll.u32 %s2286_s21, 7  ;;  %s2204_s21 = smov [#allocation2]  }
 0x9a9   : > { %s2675_s13 = scalar_lea.hbm %s2726_s11, %s1764_s25  ;;  %p2135_p13 = pneg %p2134_p12 }
 0x9aa   : > { %s2136_s30 = sshll.u32 %s2204_s21, 4  ;;  %s2137_s30 = int_to_ptr.vmem [resolvable:$false] %s2136_s30 }
 0x9ab   : > { %s2138_s0 = scalar_lea.vmem %s2137_s30, 256  ;;  %p2139_p0 = scmp.lt.s32.totalorder %s2670_s12, %s2137_s30 }
 0x9ac   : > { %p2140_p1 = scmp.lt.s32.totalorder %s2138_s0, %s2132_s22 }
 0x9ae   : > { %p2141_p2 = por %p2140_p1, %p2139_p0 }
 0x9b0   : > { %p2142_p3 = pnand %p2141_p2, %p2135_p13 }
 0xa12   : > { %v1509_v37 = vpop.permute.xlu1 %1508 }
 0xa13   : > { %v1517_v17 = vsel %vm1021_vm6, %v1515_v38, %v1509_v37 }
 0xa1a   : > { %v1512_v39 = vpop.permute.xlu1 %1511 }
 0xa1b   : > { %v1519_v40 = vsel %vm1025_vm7, %v1517_v17, %v1512_v39 }
 0xa1c   : > { %2018 = vmatmul.mubr.bf16.vlgmr.msra.gmra.mrb[16].mxu0 %v1519_v40 }
 0xaef   : > { %v1619_v20 = vpop.f32.mrb[16].mxu0 }
 0xaf0   : > { %1625 = vst [vmem:[%s377_s16] sm:$0xff] %v1619_v20  ;;  %v2019_v41 = vpop.f32.mrb[17].mxu0 }
 0xaf1   : > { %v1622_v6 = vpop.f32.mrb[18].mxu0 }
 0xaf2   : > { %2145 = shalt.err (!%p2142_p3)
}
 0xaf3   : > { %s2146_s15 = scalar_lea.hbm %s2675_s13, 128  ;;  %s2150_s29 = scalar_lea.hbm %s2726_s11, 256 }
 0xaf4   : > { %p2147_p4 = scmp.ne.s32.totalorder %s2675_s13, %s2146_s15  ;;  %p2151_p9 = scmp.lt.u32.totalorder %s2675_s13, %s2726_s11 }
 0xaf5   : > { %p2152_p10 = scmp.lt.u32.totalorder %s2150_s29, %s2146_s15  ;;  %p2154_p12 = scmp.lt.u32.totalorder %s2146_s15, %s2675_s13 }
 0xaf6   : > { %p2148_p7 = pnand %p2147_p4, %p2303_p5 }
 0xaf7   : > { %p2153_p11 = por %p2152_p10, %p2151_p9 }
 0xaf8   : > { %p2149_p8 = pneg %p2148_p7 }
 0xaf9   : > { %p2155_p13 = por %p2154_p12, %p2153_p11 }
 0xafb   : > { %p2156_p0 = pnand %p2155_p13, %p2149_p8 }
 0xafd   : > { %2159 = shalt.err (!%p2156_p0)
}
 0xafe   : > { %2021 = dma.vmem_to_hbm [thread:$0]  (%p2303_p5), %s2670_s12, 128, %s2675_s13, %s1627_s14   ;;  %v2020_v42 = vpop.f32.mrb[19].mxu0 }
 0xaff PF: > { %p2027_p1 = scmp.ge.s32.totalorder %s2194_s20, 2  ;;  %s1652_s0 = sand.u32 1, %s2182_s17  }
 0xb00   : > { %s1653_s22 = scalar_lea.sflag [#allocation3], %s1652_s0 }
 0xb01   : > { %p2024_p2 = pnand %p2027_p1, %p2307_p6 }
 0xb03   : > { %2177 = dma.done.wait (!%p2024_p2), %s1653_s22, 128  }
 0xb04   : > { %2179 = vsyncadd (!%p2024_p2), %s1653_s22, 4294967168  ;;  %p21_p3 = scmp.ge.s32.totalorder %s2290_s23, 4   ;;  %s2734_s17 = smov %s2186_s18 }
 0xb05   : > { %s2735_s18 = smov %s2190_s19  ;;  %s2736_s19 = smov %s2301_s26 }
 0xb06   : > { %s2737_s20 = smov %s2290_s23  ;;  %23 = sbr.rel (!%p21_p3) target bundleno = 5 (0x5), region = 99 }
 0xb0d   :  { %1658 = vsyncpa [#allocation3], 1 }
 0xb0e   :  { %1660 = vsyncpa [#allocation3 + $0x1], 1 }

</bundles_post_ra>
